<compile_context>
chip_gen: v7x
topology: tpu7x:2x2x1
jax: 0.10.0
libtpu: 0.0.40
codegen_flags: <defaults>
</compile_context>

<pallas_src>
import math
import functools

import jax
import jax.numpy as jnp
import numpy as np
from jax.experimental import pallas as pl
from jax.experimental.pallas import tpu as pltpu


# ----------------------------------------------------------------------------
# Kernels
# ----------------------------------------------------------------------------
def _rope_attn_kernel(x_ref, wqkv_ref, bqkv_ref, wo_ref, bo_ref, cos_ref,
                      sin_ref, o_ref, *, num_heads, head_dim, temperature,
                      compute_dtype, approx_recip):
    """One grid step == one block of `block_b` batch rows (fused forward)."""
    f32 = jnp.float32
    cd = compute_dtype
    Bt, S, E = x_ref.shape
    R = Bt * S
    Dh = head_dim

    # --- fused QKV projection: ONE wide (R, E) x (E, 3E) MXU matmul ------------
    x2 = x_ref[...].reshape(R, E)
    qkv = (jnp.dot(x2, wqkv_ref[...], preferred_element_type=f32)
           + bqkv_ref[...].astype(f32))                       # (R, 3E) f32
    q2 = qkv[:, 0 * E:1 * E]
    k2 = qkv[:, 1 * E:2 * E]
    v = qkv[:, 2 * E:3 * E].reshape(Bt, S, E).astype(cd)      # cast once

    # --- interleaved RoPE -------------------------------------------------------
    # cos / signed-sin arrive host-expanded to (S, E) (sign of the pair-swap folded
    # into sin), so the kernel does two lane rotations + one parity select + two
    # FMAs, broadcast over the batch block.  RoPE math stays in f32 (portable).
    cos3 = cos_ref[...][None, :, :]                            # (1, S, E)
    sin3 = sin_ref[...][None, :, :]
    lane = jax.lax.broadcasted_iota(jnp.int32, (R, E), 1)
    even = (lane % 2) == 0                                     # hoisted; reused q & k

    use_roll = (E % 128 == 0)   # lane-aligned rotate -> XLU; tiny E fits one vreg

    def _partner(t2):
        # partner[:, 2i] = t[:, 2i+1] ; partner[:, 2i+1] = t[:, 2i]
        if use_roll:
            nxt = pltpu.roll(t2, shift=E - 1, axis=1)          # t[:, j+1]
            prv = pltpu.roll(t2, shift=1, axis=1)              # t[:, j-1]
        else:
            nxt = jnp.concatenate([t2[:, 1:], t2[:, :1]], axis=1)
            prv = jnp.concatenate([t2[:, -1:], t2[:, :-1]], axis=1)
        return jnp.where(even, nxt, prv)

    def _rope(t2):
        t3 = t2.reshape(Bt, S, E)
        p3 = _partner(t2).reshape(Bt, S, E)
        return (t3 * cos3 + p3 * sin3).astype(cd)              # cast once

    q = _rope(q2)                                              # (Bt, S, E) cd
    k = _rope(k2)

    # --- per-head attention, head-concat + Wo as per-head accumulation ---------
    scale = temperature / math.sqrt(Dh)
    y = jnp.broadcast_to(bo_ref[...].astype(f32), (R, E))
    # TODO(synk): for long sequences tile the KV axis (flash-style online softmax)
    # instead of materializing the full (Bt, S, S) score tensor per head.
    for h in range(num_heads):                                 # static, small H
        lo = h * Dh
        qh = q[:, :, lo:lo + Dh]
        kh = k[:, :, lo:lo + Dh]
        vh = v[:, :, lo:lo + Dh]
        s = jnp.einsum('bqd,bkd->bqk', qh, kh,
                       preferred_element_type=f32) * scale     # (Bt, S, S) f32
        s = s - jnp.max(s, axis=-1, keepdims=True)
        p = jnp.exp(s)
        inv = pl.reciprocal(jnp.sum(p, axis=-1, keepdims=True),
                            approx=approx_recip)               # EUP slot
        p = (p * inv).astype(cd)
        oh = jnp.einsum('bqk,bkd->bqd', p, vh,
                        preferred_element_type=f32)            # (Bt, S, Dh) f32
        y = y + jnp.dot(oh.reshape(R, Dh).astype(cd), wo_ref[h],
                        preferred_element_type=f32)            # Wo[h]: (Dh, E)
    o_ref[...] = y.reshape(Bt, S, E).astype(o_ref.dtype)


def _uniform_attn_kernel(x_ref, wv_ref, bv_ref, wo_ref, bo_ref, o_ref, *,
                         compute_dtype):
    """temperature == 0 -> softmax(0) is uniform.  mean over keys commutes with the
    affine V and O projections, so only Bt rows hit the MXU (S-fold FLOP cut)."""
    f32 = jnp.float32
    cd = compute_dtype
    Bt, S, E = x_ref.shape
    m = jnp.mean(x_ref[...].astype(f32), axis=1)               # (Bt, E)
    mv = (jnp.dot(m.astype(cd), wv_ref[...], preferred_element_type=f32)
          + bv_ref[...].astype(f32))
    row = (jnp.dot(mv.astype(cd), wo_ref[...], preferred_element_type=f32)
           + bo_ref[...].astype(f32))                          # (Bt, E)
    o_ref[...] = jnp.broadcast_to(row.reshape(Bt, 1, E),
                                  (Bt, S, E)).astype(o_ref.dtype)


# ----------------------------------------------------------------------------
# Wrapper
# ----------------------------------------------------------------------------
def _num_parallel_tensorcores():
    """Chips where >=2 'parallel' grid steps map onto separate TensorCores
    (v7x, v4/v5p megacore).  Single-TC chips (v5e, v6e) should run one big
    grid step instead (the grid is a serial loop there)."""
    try:
        kind = jax.devices()[0].device_kind.lower()
    except Exception:
        return 1
    if any(tag in kind for tag in ("v7", "v4", "v5p")):
        return 2
    return 1


def _choose_block_b(batch, seq_len, num_cores, target_rows=256):
    if num_cores <= 1:
        return batch                      # serial grid: one step, max MXU M-rows
    best = 1
    for d in range(1, batch + 1):
        if batch % d:
            continue
        if batch // d < num_cores:        # keep >= num_cores parallel grid steps
            break
        best = d
        if d * seq_len >= target_rows:
            break
    return best


def _vmem_limit_bytes(block_b, S, E, cd, out_dtype):
    """Generous scoped-VMEM request derived from the block shapes (clamped to the
    v7x 64 MiB/TC physical budget)."""
    cdb = jnp.dtype(cd).itemsize
    odb = jnp.dtype(out_dtype).itemsize
    R = block_b * S
    io = 2 * block_b * S * E * (cdb + odb)                     # double-buffered x/out
    weights = 2 * ((3 * E * E + E * E) * cdb + 4 * E * 4 + 2 * S * E * 4)
    interm = 16 * R * E * 4 + 8 * block_b * S * S * 4          # f32 intermediates
    est = io + weights + interm + (8 << 20)
    return int(min(max(est, 32 << 20), 64 << 20))


def rope_attention(x, params, cos_half, sin_half, *, num_heads, temperature,
                   compute_dtype=jnp.bfloat16, approx_recip=True, block_b=None,
                   single_buffer_weights=True):
    """Fused RoPE multi-head self-attention (forward, eval-mode dropout).

    cos_half / sin_half: (S, head_dim//2) interleaved RoPE tables (rot_matrix[:S]).
    """
    B, S, E = x.shape
    out_dtype = x.dtype
    assert E % num_heads == 0, "embed_dim must be divisible by num_heads"
    head_dim = E // num_heads
    assert head_dim % 2 == 0, "RoPE needs an even head_dim"

    num_cores = _num_parallel_tensorcores()
    if block_b is None:
        block_b = _choose_block_b(B, S, num_cores)
    assert B % block_b == 0
    grid = (B // block_b,)

    cd = compute_dtype
    xc = x.astype(cd)                       # halve activation HBM traffic for bf16
    temperature = float(temperature)

    x_spec = pl.BlockSpec((block_b, S, E), lambda b: (b, 0, 0))
    out_spec = pl.BlockSpec((block_b, S, E), lambda b: (b, 0, 0))
    cparams = dict(
        dimension_semantics=("parallel",),
        vmem_limit_bytes=_vmem_limit_bytes(block_b, S, E, cd, out_dtype))

    if temperature == 0.0:
        # Module default: ScaledDotProductAttention(dropout) binds dropout to the
        # `temperature` positional arg -> uniform attention.  Q/K/RoPE/softmax are
        # dead work and their weights are not even streamed.
        kernel = functools.partial(_uniform_attn_kernel, compute_dtype=cd)
        inputs = (xc,
                  params["wv"].astype(cd), params["bv"].astype(jnp.float32),
                  params["wo"].astype(cd), params["bo"].astype(jnp.float32))
        const_shapes = [(E, E), (1, E), (E, E), (1, E)]
    else:
        # Host-side packing: fused QKV weight, per-head Wo, pre-expanded RoPE
        # tables with the pair-swap sign folded into sin.
        wqkv = jnp.concatenate([params["wq"], params["wk"], params["wv"]],
                               axis=1).astype(cd)                        # (E, 3E)
        bqkv = jnp.concatenate([params["bq"], params["bk"], params["bv"]],
                               axis=1).astype(jnp.float32)               # (1, 3E)
        wo_h = params["wo"].reshape(num_heads, head_dim, E).astype(cd)   # (H, Dh, E)
        parity = (jnp.arange(head_dim) % 2 == 0)
        sign = jnp.where(parity, -1.0, 1.0).astype(jnp.float32)
        cos_dh = jnp.repeat(cos_half.astype(jnp.float32), 2, axis=-1)    # (S, Dh)
        sin_dh = jnp.repeat(sin_half.astype(jnp.float32), 2, axis=-1) * sign
        cos_e = jnp.tile(cos_dh, (1, num_heads))                         # (S, E)
        sin_e = jnp.tile(sin_dh, (1, num_heads))                         # (S, E)

        kernel = functools.partial(
            _rope_attn_kernel, num_heads=num_heads, head_dim=head_dim,
            temperature=temperature, compute_dtype=cd, approx_recip=approx_recip)
        inputs = (xc, wqkv, bqkv, wo_h, params["bo"].astype(jnp.float32),
                  cos_e, sin_e)
        const_shapes = [(E, 3 * E), (1, 3 * E), (num_heads, head_dim, E), (1, E),
                        (S, E), (S, E)]

    def _run(single_buffer):
        kw = {"pipeline_mode": pl.Buffered(1)} if single_buffer else {}

        def const_spec(shape):
            nd = len(shape)
            return pl.BlockSpec(shape, lambda b: (0,) * nd, **kw)

        return pl.pallas_call(
            kernel,
            out_shape=jax.ShapeDtypeStruct((B, S, E), out_dtype),
            grid_spec=pltpu.PrefetchScalarGridSpec(
                num_scalar_prefetch=0,
                grid=grid,
                in_specs=[x_spec] + [const_spec(s) for s in const_shapes],
                out_specs=out_spec),
            compiler_params=pltpu.CompilerParams(**cparams),
        )(*inputs)

    if single_buffer_weights:
        try:
            # Weights / tables never change block index: fetch once, single buffer
            # (halves their resident VMEM — matters most on v7x's 64 MiB/TC).
            return _run(True)
        except Exception:   # fallback if Buffered(1)/pipeline_mode is unsupported
            pass
    return _run(False)


# ----------------------------------------------------------------------------
# Host-side helpers: parameter init, RoPE tables, pure-JAX reference.
# ----------------------------------------------------------------------------
def init_params(key, embed_dim):
    ks = jax.random.split(key, 8)

    def lin(kw, kb, std):
        w = jax.random.normal(kw, (embed_dim, embed_dim), jnp.float32) * std
        b = jax.random.normal(kb, (1, embed_dim), jnp.float32) * 0.02
        return w, b

    wq, bq = lin(ks[0], ks[1], 0.01)   # nn.init.normal_(wq.weight, mean=0, std=0.01)
    wk, bk = lin(ks[2], ks[3], 0.10)
    wv, bv = lin(ks[4], ks[5], 0.10)
    wo, bo = lin(ks[6], ks[7], 0.10)
    return dict(wq=wq, bq=bq, wk=wk, bk=bk, wv=wv, bv=bv, wo=wo, bo=bo)


def precompute_rope(head_dim, max_seq_len, theta=10000.0):
    """Interleaved RoPE angles: cos/sin of shape (max_seq_len, head_dim//2)."""
    freqs = 1.0 / (theta ** (jnp.arange(0, head_dim, 2, dtype=jnp.float32) / head_dim))
    t = jnp.arange(max_seq_len, dtype=jnp.float32)
    ang = jnp.outer(t, freqs)
    return jnp.cos(ang), jnp.sin(ang)


def reference(x, params, cos_half, sin_half, num_heads, temperature):
    """Pure-JAX mirror of the PyTorch RoPEAttention forward (eval mode, f32)."""
    B, S, E = x.shape
    Dh = E // num_heads

    def lin(t, w, b):
        return t @ w + b[0]

    q = lin(x, params["wq"], params["bq"])
    k = lin(x, params["wk"], params["bk"])
    v = lin(x, params["wv"], params["bv"])

    def split(t):
        return t.reshape(B, S, num_heads, Dh).transpose(0, 2, 1, 3)   # (B,H,S,Dh)

    q, k, v = split(q), split(k), split(v)

    def rope(t):
        te, to = t[..., 0::2], t[..., 1::2]
        c = cos_half[None, None]
        s = sin_half[None, None]
        oe = te * c - to * s
        oo = te * s + to * c
        return jnp.stack([oe, oo], axis=-1).reshape(t.shape)

    q, k = rope(q), rope(k)
    score = (q @ jnp.swapaxes(k, -2, -1)) * temperature / math.sqrt(Dh)
    score = jax.nn.softmax(score, axis=-1)              # dropout -> identity (eval)
    out = score @ v
    out = out.transpose(0, 2, 1, 3).reshape(B, S, E)    # concat
    return out @ params["wo"] + params["bo"][0]


# ----------------------------------------------------------------------------
if __name__ == "__main__":
    B, S, E, H = 2, 8, 32, 4
    MAX_SEQ_LEN = 16
    Dh = E // H
    DROPOUT = 0.0
    # ScaledDotProductAttention(dropout): dropout binds positionally to `temperature`.
    TEMPERATURE = DROPOUT

    key = jax.random.PRNGKey(0)
    kx, kp = jax.random.split(key)
    x = jax.random.normal(kx, (B, S, E), jnp.float32)
    params = init_params(kp, E)

    cos_half, sin_half = precompute_rope(Dh, MAX_SEQ_LEN)
    cos_half, sin_half = cos_half[:S], sin_half[:S]          # rot_matrix[:seq_len]

    # 1) Exact default-module semantics (temperature == dropout == 0.0), bf16 path.
    out0 = jax.block_until_ready(rope_attention(
        x, params, cos_half, sin_half, num_heads=H, temperature=TEMPERATURE))
    ref0 = reference(x, params, cos_half, sin_half, H, TEMPERATURE)
    np.testing.assert_allclose(np.asarray(out0), np.asarray(ref0), rtol=2e-2, atol=2e-2)

    # 2) temperature=1.0 in full f32 (tight check of QKV / RoPE / softmax / Wo math).
    out1 = jax.block_until_ready(rope_attention(
        x, params, cos_half, sin_half, num_heads=H, temperature=1.0,
        compute_dtype=jnp.float32, approx_recip=False))
    ref1 = reference(x, params, cos_half, sin_half, H, 1.0)
    np.testing.assert_allclose(np.asarray(out1), np.asarray(ref1), rtol=2e-5, atol=2e-5)

    # 3) temperature=1.0 on the bf16 / approx-reciprocal fast path.
    out2 = jax.block_until_ready(rope_attention(
        x, params, cos_half, sin_half, num_heads=H, temperature=1.0))
    np.testing.assert_allclose(np.asarray(out2), np.asarray(ref1), rtol=3e-2, atol=3e-2)

    print("KERNEL_OK")
</pallas_src>

<mosaic_0001>
module attributes {stable_mosaic.version = 11 : i64} {
  func.func @_uniform_attn_kernel(%arg0: i32, %arg1: memref<2x8x32xbf16, #tpu.memory_space<vmem>>, %arg2: memref<32x32xbf16, #tpu.memory_space<vmem>>, %arg3: memref<1x32xf32, #tpu.memory_space<vmem>>, %arg4: memref<32x32xbf16, #tpu.memory_space<vmem>>, %arg5: memref<1x32xf32, #tpu.memory_space<vmem>>, %arg6: memref<2x8x32xf32, #tpu.memory_space<vmem>>) attributes {dimension_semantics = [#tpu.dimension_semantics<parallel>], iteration_bounds = array<i64: 1>, scalar_prefetch = 0 : i64, scratch_operands = 0 : i64, tpu.core_type = #tpu.core_type<tc>, window_params = [{transform_indices = @transform_0, window_bounds = array<i64: 2, 8, 32>}, {pipeline_mode = #tpu.pipeline_mode<synchronous>, transform_indices = @transform_1, window_bounds = array<i64: 32, 32>}, {pipeline_mode = #tpu.pipeline_mode<synchronous>, transform_indices = @transform_2, window_bounds = array<i64: 1, 32>}, {pipeline_mode = #tpu.pipeline_mode<synchronous>, transform_indices = @transform_3, window_bounds = array<i64: 32, 32>}, {pipeline_mode = #tpu.pipeline_mode<synchronous>, transform_indices = @transform_4, window_bounds = array<i64: 1, 32>}, {transform_indices = @transform_5, window_bounds = array<i64: 2, 8, 32>}]} {
    %c0 = arith.constant 0 : index
    %c0_0 = arith.constant 0 : index
    %c0_1 = arith.constant 0 : index
    %0 = vector.load %arg1[%c0, %c0_0, %c0_1] : memref<2x8x32xbf16, #tpu.memory_space<vmem>>, vector<2x8x32xbf16>
    %1 = arith.extf %0 : vector<2x8x32xbf16> to vector<2x8x32xf32>
    %cst = arith.constant dense<0.000000e+00> : vector<2x32xf32>
    %2 = vector.multi_reduction <add>, %1, %cst [1] : vector<2x8x32xf32> to vector<2x32xf32>
    %cst_2 = arith.constant 8.000000e+00 : f32
    %3 = vector.broadcast %cst_2 : f32 to vector<2x32xf32>
    %4 = arith.divf %2, %3 : vector<2x32xf32>
    %5 = arith.truncf %4 : vector<2x32xf32> to vector<2x32xbf16>
    %c0_3 = arith.constant 0 : index
    %c0_4 = arith.constant 0 : index
    %6 = vector.load %arg2[%c0_3, %c0_4] : memref<32x32xbf16, #tpu.memory_space<vmem>>, vector<32x32xbf16>
    %cst_5 = arith.constant dense<0.000000e+00> : vector<2x32xf32>
    %7 = tpu.matmul %5, %6, %cst_5 {dimension_numbers = #tpu.dot_dimension_numbers<[1], [0], [0], [1], [0, 0, 1, 1], [], []>} : vector<2x32xbf16>, vector<32x32xbf16>, vector<2x32xf32> -> vector<2x32xf32>
    %c0_6 = arith.constant 0 : index
    %c0_7 = arith.constant 0 : index
    %8 = vector.load %arg3[%c0_6, %c0_7] : memref<1x32xf32, #tpu.memory_space<vmem>>, vector<1x32xf32>
    %9 = vector.broadcast %8 : vector<1x32xf32> to vector<2x32xf32>
    %10 = arith.addf %7, %9 : vector<2x32xf32>
    %11 = arith.truncf %10 : vector<2x32xf32> to vector<2x32xbf16>
    %c0_8 = arith.constant 0 : index
    %c0_9 = arith.constant 0 : index
    %12 = vector.load %arg4[%c0_8, %c0_9] : memref<32x32xbf16, #tpu.memory_space<vmem>>, vector<32x32xbf16>
    %cst_10 = arith.constant dense<0.000000e+00> : vector<2x32xf32>
    %13 = tpu.matmul %11, %12, %cst_10 {dimension_numbers = #tpu.dot_dimension_numbers<[1], [0], [0], [1], [0, 0, 1, 1], [], []>} : vector<2x32xbf16>, vector<32x32xbf16>, vector<2x32xf32> -> vector<2x32xf32>
    %c0_11 = arith.constant 0 : index
    %c0_12 = arith.constant 0 : index
    %14 = vector.load %arg5[%c0_11, %c0_12] : memref<1x32xf32, #tpu.memory_space<vmem>>, vector<1x32xf32>
    %15 = vector.broadcast %14 : vector<1x32xf32> to vector<2x32xf32>
    %16 = arith.addf %13, %15 : vector<2x32xf32>
    %17 = vector.shape_cast %16 : vector<2x32xf32> to vector<2x1x32xf32>
    %18 = vector.shape_cast %17 : vector<2x1x32xf32> to vector<2x1x32xf32>
    %19 = vector.broadcast %18 : vector<2x1x32xf32> to vector<2x8x32xf32>
    %c0_13 = arith.constant 0 : index
    %c0_14 = arith.constant 0 : index
    %c0_15 = arith.constant 0 : index
    %20 = vector.load %arg6[%c0_13, %c0_14, %c0_15] : memref<2x8x32xf32, #tpu.memory_space<vmem>>, vector<2x8x32xf32>
    tpu.vector_store %arg6[%c0_13, %c0_14, %c0_15], %19 {strides = array<i32>} : memref<2x8x32xf32, #tpu.memory_space<vmem>>, vector<2x8x32xf32>,
    return
  }
  func.func @transform_0(%arg0: i32) -> (i32, i32, i32) {
    %c0_i32 = arith.constant 0 : i32
    %c0_i32_0 = arith.constant 0 : i32
    %c0_i32_1 = arith.constant 0 : i32
    return %arg0, %c0_i32, %c0_i32_0 : i32, i32, i32
  }
  func.func @transform_1(%arg0: i32) -> (i32, i32) {
    %c0_i32 = arith.constant 0 : i32
    %c0_i32_0 = arith.constant 0 : i32
    %c0_i32_1 = arith.constant 0 : i32
    return %c0_i32, %c0_i32_0 : i32, i32
  }
  func.func @transform_2(%arg0: i32) -> (i32, i32) {
    %c0_i32 = arith.constant 0 : i32
    %c0_i32_0 = arith.constant 0 : i32
    %c0_i32_1 = arith.constant 0 : i32
    return %c0_i32, %c0_i32_0 : i32, i32
  }
  func.func @transform_3(%arg0: i32) -> (i32, i32) {
    %c0_i32 = arith.constant 0 : i32
    %c0_i32_0 = arith.constant 0 : i32
    %c0_i32_1 = arith.constant 0 : i32
    return %c0_i32, %c0_i32_0 : i32, i32
  }
  func.func @transform_4(%arg0: i32) -> (i32, i32) {
    %c0_i32 = arith.constant 0 : i32
    %c0_i32_0 = arith.constant 0 : i32
    %c0_i32_1 = arith.constant 0 : i32
    return %c0_i32, %c0_i32_0 : i32, i32
  }
  func.func @transform_5(%arg0: i32) -> (i32, i32, i32) {
    %c0_i32 = arith.constant 0 : i32
    %c0_i32_0 = arith.constant 0 : i32
    %c0_i32_1 = arith.constant 0 : i32
    return %arg0, %c0_i32, %c0_i32_0 : i32, i32, i32
  }
}

module attributes {stable_mosaic.version = 11 : i64} {
  func.func @_uniform_attn_kernel(%arg0: i32, %arg1: memref<2x8x32xbf16, #tpu.memory_space<vmem>>, %arg2: memref<32x32xbf16, #tpu.memory_space<vmem>>, %arg3: memref<1x32xf32, #tpu.memory_space<vmem>>, %arg4: memref<32x32xbf16, #tpu.memory_space<vmem>>, %arg5: memref<1x32xf32, #tpu.memory_space<vmem>>, %arg6: memref<2x8x32xf32, #tpu.memory_space<vmem>>) attributes {dimension_semantics = [#tpu.dimension_semantics<parallel>], iteration_bounds = array<i64: 1>, scalar_prefetch = 0 : i64, scratch_operands = 0 : i64, tpu.core_type = #tpu.core_type<tc>, window_params = [{transform_indices = @transform_0, window_bounds = array<i64: 2, 8, 32>}, {pipeline_mode = #tpu.pipeline_mode<synchronous>, transform_indices = @transform_1, window_bounds = array<i64: 32, 32>}, {pipeline_mode = #tpu.pipeline_mode<synchronous>, transform_indices = @transform_2, window_bounds = array<i64: 1, 32>}, {pipeline_mode = #tpu.pipeline_mode<synchronous>, transform_indices = @transform_3, window_bounds = array<i64: 32, 32>}, {pipeline_mode = #tpu.pipeline_mode<synchronous>, transform_indices = @transform_4, window_bounds = array<i64: 1, 32>}, {transform_indices = @transform_5, window_bounds = array<i64: 2, 8, 32>}]} {
    %c0 = arith.constant 0 : index
    %c0_0 = arith.constant 0 : index
    %c0_1 = arith.constant 0 : index
    %0 = vector.load %arg1[%c0, %c0_0, %c0_1] : memref<2x8x32xbf16, #tpu.memory_space<vmem>>, vector<2x8x32xbf16>
    %1 = arith.extf %0 : vector<2x8x32xbf16> to vector<2x8x32xf32>
    %cst = arith.constant dense<0.000000e+00> : vector<2x32xf32>
    %2 = vector.multi_reduction <add>, %1, %cst [1] : vector<2x8x32xf32> to vector<2x32xf32>
    %cst_2 = arith.constant 8.000000e+00 : f32
    %3 = vector.broadcast %cst_2 : f32 to vector<2x32xf32>
    %4 = arith.divf %2, %3 : vector<2x32xf32>
    %5 = arith.truncf %4 : vector<2x32xf32> to vector<2x32xbf16>
    %c0_3 = arith.constant 0 : index
    %c0_4 = arith.constant 0 : index
    %6 = vector.load %arg2[%c0_3, %c0_4] : memref<32x32xbf16, #tpu.memory_space<vmem>>, vector<32x32xbf16>
    %cst_5 = arith.constant dense<0.000000e+00> : vector<2x32xf32>
    %7 = tpu.matmul %5, %6, %cst_5 {dimension_numbers = #tpu.dot_dimension_numbers<[1], [0], [0], [1], [0, 0, 1, 1], [], []>} : vector<2x32xbf16>, vector<32x32xbf16>, vector<2x32xf32> -> vector<2x32xf32>
    %c0_6 = arith.constant 0 : index
    %c0_7 = arith.constant 0 : index
    %8 = vector.load %arg3[%c0_6, %c0_7] : memref<1x32xf32, #tpu.memory_space<vmem>>, vector<1x32xf32>
    %9 = vector.broadcast %8 : vector<1x32xf32> to vector<2x32xf32>
    %10 = arith.addf %7, %9 : vector<2x32xf32>
    %11 = arith.truncf %10 : vector<2x32xf32> to vector<2x32xbf16>
    %c0_8 = arith.constant 0 : index
    %c0_9 = arith.constant 0 : index
    %12 = vector.load %arg4[%c0_8, %c0_9] : memref<32x32xbf16, #tpu.memory_space<vmem>>, vector<32x32xbf16>
    %cst_10 = arith.constant dense<0.000000e+00> : vector<2x32xf32>
    %13 = tpu.matmul %11, %12, %cst_10 {dimension_numbers = #tpu.dot_dimension_numbers<[1], [0], [0], [1], [0, 0, 1, 1], [], []>} : vector<2x32xbf16>, vector<32x32xbf16>, vector<2x32xf32> -> vector<2x32xf32>
    %c0_11 = arith.constant 0 : index
    %c0_12 = arith.constant 0 : index
    %14 = vector.load %arg5[%c0_11, %c0_12] : memref<1x32xf32, #tpu.memory_space<vmem>>, vector<1x32xf32>
    %15 = vector.broadcast %14 : vector<1x32xf32> to vector<2x32xf32>
    %16 = arith.addf %13, %15 : vector<2x32xf32>
    %17 = vector.shape_cast %16 : vector<2x32xf32> to vector<2x1x32xf32>
    %18 = vector.shape_cast %17 : vector<2x1x32xf32> to vector<2x1x32xf32>
    %19 = vector.broadcast %18 : vector<2x1x32xf32> to vector<2x8x32xf32>
    %c0_13 = arith.constant 0 : index
    %c0_14 = arith.constant 0 : index
    %c0_15 = arith.constant 0 : index
    %20 = vector.load %arg6[%c0_13, %c0_14, %c0_15] : memref<2x8x32xf32, #tpu.memory_space<vmem>>, vector<2x8x32xf32>
    tpu.vector_store %arg6[%c0_13, %c0_14, %c0_15], %19 {strides = array<i32>} : memref<2x8x32xf32, #tpu.memory_space<vmem>>, vector<2x8x32xf32>,
    return
  }
  func.func @transform_0(%arg0: i32) -> (i32, i32, i32) {
    %c0_i32 = arith.constant 0 : i32
    %c0_i32_0 = arith.constant 0 : i32
    %c0_i32_1 = arith.constant 0 : i32
    return %arg0, %c0_i32, %c0_i32_0 : i32, i32, i32
  }
  func.func @transform_1(%arg0: i32) -> (i32, i32) {
    %c0_i32 = arith.constant 0 : i32
    %c0_i32_0 = arith.constant 0 : i32
    %c0_i32_1 = arith.constant 0 : i32
    return %c0_i32, %c0_i32_0 : i32, i32
  }
  func.func @transform_2(%arg0: i32) -> (i32, i32) {
    %c0_i32 = arith.constant 0 : i32
    %c0_i32_0 = arith.constant 0 : i32
    %c0_i32_1 = arith.constant 0 : i32
    return %c0_i32, %c0_i32_0 : i32, i32
  }
  func.func @transform_3(%arg0: i32) -> (i32, i32) {
    %c0_i32 = arith.constant 0 : i32
    %c0_i32_0 = arith.constant 0 : i32
    %c0_i32_1 = arith.constant 0 : i32
    return %c0_i32, %c0_i32_0 : i32, i32
  }
  func.func @transform_4(%arg0: i32) -> (i32, i32) {
    %c0_i32 = arith.constant 0 : i32
    %c0_i32_0 = arith.constant 0 : i32
    %c0_i32_1 = arith.constant 0 : i32
    return %c0_i32, %c0_i32_0 : i32, i32
  }
  func.func @transform_5(%arg0: i32) -> (i32, i32, i32) {
    %c0_i32 = arith.constant 0 : i32
    %c0_i32_0 = arith.constant 0 : i32
    %c0_i32_1 = arith.constant 0 : i32
    return %arg0, %c0_i32, %c0_i32_0 : i32, i32, i32
  }
}

</mosaic_0001>

<bundles_post_ra>
// kernel: tpu_custom_call.1
= control target key start
LH: loop header
LB: loop body
LE: loop exit
PB: predicated region body
PF: predicated region fallthrough
CT: control target
= control target key end

     0   :  { %10 = vsyncpa [#allocation3], 0  ;;  %s540_s0 = inlined_call_operand.hbm [shape: bf16[2,8,32], index: 0, kind: input, shape index: {}]   ;;  %s541_s1 = inlined_call_operand.hbm [shape: bf16[32,32], index: 1, kind: input, shape index: {}]   ;;  %s542_s2 = inlined_call_operand.vmem [shape: f32[1,32], index: 2, kind: input, shape index: {}]   ;;  %s543_s3 = inlined_call_operand.hbm [shape: bf16[32,32], index: 3, kind: input, shape index: {}]   ;;  %s544_s4 = inlined_call_operand.vmem [shape: f32[1,32], index: 4, kind: input, shape index: {}]   ;;  %s545_s5 = inlined_call_operand.hbm [shape: f32[2,8,32], index: 5, kind: output, shape index: {}]  }
   0x1   :  { %11 = vsyncpa [#allocation6], 0 }
   0x2   :  { %12 = vsyncpa [#allocation4], 0  ;;  %s423_s18 = smov [#allocation5]   ;;  %s424_s20 = smov [#allocation2]  }
   0x3   :  { %s30_s19 = sshll.u32 %s423_s18, 4  ;;  %s18_s21 = sshll.u32 %s424_s20, 4  ;;  %s31_s19 = int_to_ptr.vmem [resolvable:$true] %s30_s19  ;;  %s464_s21 = int_to_ptr.vmem [resolvable:$true] %s18_s21 }
   0x4   :  { %s329_s24 = scalar_lea.hbm %s541_s1, 256 }
   0x5   :  { %p330_p0 = scmp.ne.s32.totalorder %s541_s1, %s329_s24  ;;  %p333_p1 = scmp.lt.u32.totalorder %s329_s24, %s541_s1 }
   0x7   :  { %p335_p2 = pnand %p333_p1, %p330_p0 }
   0x9   :  { %338 = shalt.err (!%p335_p2)
}
   0xa   :  { %s339_s29 = scalar_lea.vmem %s31_s19, 256  ;;  %p344_p4 = scmp.lt.s32.totalorder %s31_s19, %s31_s19 }
   0xb   :  { %p340_p3 = scmp.ne.s32.totalorder %s31_s19, %s339_s29  ;;  %p345_p5 = scmp.lt.s32.totalorder %s339_s29, %s339_s29 }
   0xd   :  { %p346_p6 = por %p345_p5, %p344_p4 }
   0xf   :  { %p347_p7 = pnand %p346_p6, %p340_p3 }
  0x11   :  { %350 = shalt.err (!%p347_p7)
}
  0x12   :  { %s425_s30 = smov 64   ;;  %s426_s6 = smov 4  }
  0x13   :  { %36 = dma.hbm_to_vmem [thread:$0]  %s541_s1, 256, %s31_s19, [#allocation6], %s425_s30, %s425_s30, %s426_s6  }
  0x14   :  { %s351_s11 = scalar_lea.hbm %s540_s0, 128 }
  0x15   :  { %p352_p8 = scmp.ne.s32.totalorder %s540_s0, %s351_s11  ;;  %p355_p9 = scmp.lt.u32.totalorder %s351_s11, %s540_s0 }
  0x17   :  { %p357_p10 = pnand %p355_p9, %p352_p8 }
  0x19   :  { %360 = shalt.err (!%p357_p10)
}
  0x1a   :  { %s361_s16 = scalar_lea.vmem %s464_s21, 128  ;;  %p366_p12 = scmp.lt.s32.totalorder %s464_s21, %s464_s21 }
  0x1b   :  { %p362_p11 = scmp.ne.s32.totalorder %s464_s21, %s361_s16  ;;  %p367_p13 = scmp.lt.s32.totalorder %s361_s16, %s361_s16 }
  0x1d   :  { %p368_p0 = por %p367_p13, %p366_p12 }
  0x1f   :  { %p369_p1 = pnand %p368_p0, %p362_p11 }
  0x21   :  { %372 = shalt.err (!%p369_p1)
}
  0x22   :  { %24 = dma.hbm_to_vmem [thread:$0]  %s540_s0, 128, %s464_s21, [#allocation3], %s425_s30, %s425_s30, %s426_s6  }
  0x23   :  { %s427_s18 = smov [#allocation7]   ;;  %s373_s23 = scalar_lea.hbm %s543_s3, 256 }
  0x24   :  { %s44_s19 = sshll.u32 %s427_s18, 4  ;;  %p374_p2 = scmp.ne.s32.totalorder %s543_s3, %s373_s23  ;;  %s45_s19 = int_to_ptr.vmem [resolvable:$true] %s44_s19 }
  0x25   :  { %p377_p3 = scmp.lt.u32.totalorder %s373_s23, %s543_s3 }
  0x27   :  { %p379_p4 = pnand %p377_p3, %p374_p2 }
  0x29   :  { %382 = shalt.err (!%p379_p4)
}
  0x2a   :  { %s383_s28 = scalar_lea.vmem %s45_s19, 256  ;;  %p388_p6 = scmp.lt.s32.totalorder %s45_s19, %s45_s19 }
  0x2b   :  { %p384_p5 = scmp.ne.s32.totalorder %s45_s19, %s383_s28  ;;  %p389_p7 = scmp.lt.s32.totalorder %s383_s28, %s383_s28 }
  0x2d   :  { %p390_p8 = por %p389_p7, %p388_p6 }
  0x2f   :  { %p391_p9 = pnand %p390_p8, %p384_p5 }
  0x31   :  { %394 = shalt.err (!%p391_p9)
}
  0x32   :  { %50 = dma.hbm_to_vmem [thread:$0]  %s543_s3, 256, %s45_s19, [#allocation6], %s425_s30, %s425_s30, %s426_s6  }
  0x33   :  { %417 = dma.done.wait [#allocation3], 128  }
  0x34   :  { %418 = vsyncadd [#allocation3], 4294967168 }
  0x35   :  { %419 = dma.done.wait [#allocation6], 512  }
  0x36   :  { %420 = vsyncadd [#allocation6], 4294966784  ;;  %v428_v0 = vmov 0.0   ;;  %vm429_vm0 = vmmov 0   ;;  %v325_v1 = vld [vmem:[#allocation5] sm:$0xff]   ;;  %v326_v2 = vld [vmem:[#allocation5 + $0x8] sm:$0xff]   ;;  %v231_v39 = vlaneseq }
  0x37   :  { %298 = vmatprep.subr.bf16.mxu0 %v428_v0  ;;  %302 = vmatprep.mubr.msk.bf16.mxu0 %vm429_vm0, %v428_v0  ;;  %v289_v3 = vld [vmem:[#allocation2] sm:$0xff]   ;;  %vm67_vm1 = vcmask 261120   ;;  %v327_v6 = vld [vmem:[#allocation7] sm:$0xff]   ;;  %vm102_vm2 = vcmask 1041409   ;;  %v430_v37 = vmov 1966171168  }
  0x38   :  { %306 = vmatprep.subr.bf16.mxu1 %v428_v0  ;;  %310 = vmatprep.mubr.msk.bf16.mxu1 %vm429_vm0, %v428_v0  ;;  %v290_v4 = vunpack.c.l.bf16 %v289_v3  ;;  %v291_v5 = vunpack.c.h.bf16 %v289_v3  ;;  %v328_v29 = vld [vmem:[#allocation7 + $0x8] sm:$0xff]   ;;  %v229_v38 = vunpack.c.l.s4 %v430_v37  ;;  %v232_v41 = vshrl.u32 %v231_v39, 7 }
  0x39   :  { %299 = vmatpush3.bf16.msra.mxu0 %v325_v1  ;;  %307 = vmatpush3.bf16.msra.mxu1 %v327_v6  ;;  %v280_v30 = vld [vmem:[%s542_s2] ss:$0 sm:$0xff]  ;;  %s431_s2 = smov [#allocation8]  }
  0x3a   :  { %300 = vmatprep.subr.bf16.mxu0 %v428_v0  ;;  %v68_v7 = vsel %vm67_vm1, %v290_v4, 0.0  ;;  %v75_v8 = vsel %vm67_vm1, %v291_v5, 0.0  ;;  %308 = vmatprep.subr.bf16.mxu1 %v428_v0  ;;  %v230_v40 = vunpack.c.0.s8 %v229_v38  ;;  %v284_v42 = vld [vmem:[%s544_s4] ss:$0 sm:$0xff]  ;;  %v252_v49 = vsub.s32 0, %v232_v41  ;;  %s267_s7 = sshll.u32 %s431_s2, 4  ;;  %s268_s7 = int_to_ptr.vmem [resolvable:$true] %s267_s7 }
  0x3b   :  { %v69_v9 = vrot.slane %v68_v7, 4  ;;  %v76_v10 = vrot.slane %v75_v8, 4  ;;  %s395_s4 = scalar_lea.vmem %s268_s7, 256  ;;  %p400_p11 = scmp.lt.s32.totalorder %s268_s7, %s268_s7 }
  0x3c   :  { %v233_v43 = vsub.s32 %v230_v40, %v232_v41  ;;  %p396_p10 = scmp.ne.s32.totalorder %s268_s7, %s395_s4  ;;  %p401_p12 = scmp.lt.s32.totalorder %s395_s4, %s395_s4 }
  0x3d   :  { %301 = vmatpush3.bf16.msra.mxu0 %v326_v2  ;;  %v70_v11 = vadd.f32 %v69_v9, %v68_v7  ;;  %v77_v12 = vadd.f32 %v76_v10, %v75_v8  ;;  %309 = vmatpush3.bf16.msra.mxu1 %v328_v29 }
  0x3e   :  { %p402_p13 = por %p401_p12, %p400_p11 }
  0x3f   :  { %v71_v13 = vrot.slane %v70_v11, 2  ;;  %v78_v14 = vrot.slane %v77_v12, 2 }
  0x40   :  { %p403_p0 = pnand %p402_p13, %p396_p10 }
  0x41   :  { %v72_v15 = vadd.f32 %v71_v13, %v70_v11  ;;  %v79_v16 = vadd.f32 %v78_v14, %v77_v12 }
  0x43   :  { %v73_v17 = vrot.slane %v72_v15, 1  ;;  %v80_v18 = vrot.slane %v79_v16, 1 }
  0x45   :  { %v74_v19 = vadd.f32 %v73_v17, %v72_v15  ;;  %v81_v20 = vadd.f32 %v80_v18, %v79_v16 }
  0x47   :  { %v83_v21 = vmul.f32 0.125, %v74_v19  ;;  %v84_v22 = vmul.f32 0.125, %v81_v20 }
  0x49   :  { %v85_v23 = vpack.c.bf16 %v83_v21, %v83_v21  ;;  %v86_v24 = vpack.c.bf16 %v84_v22, %v84_v22 }
  0x4b   :  { %v100_v25 = vunpack.c.l.b16 %v85_v23  ;;  %v101_v26 = vunpack.c.l.b16 %v86_v24 }
  0x4d   :  { %v103_v27 = vsel %vm102_vm2, %v101_v26, %v100_v25 }
  0x4e   :  { %v104_v28 = vpack.c.b16 %v103_v27, %v103_v27 }
  0x50   :  { %303 = vmatmul.mubr.msk.bf16.vlgmr.msra.gmra.mrb[0].mxu0 %vm67_vm1, %v104_v28 }
 0x123   :  { %v154_v31 = vpop.f32.mrb[0].mxu0 }
 0x124   :  { %v155_v32 = vadd.f32 %v280_v30, %v154_v31  ;;  %v304_v33 = vpop.f32.mrb[1].mxu0 }
 0x125   :  { %v157_v34 = vpop.f32.mrb[2].mxu0 }
 0x126   :  { %v160_v35 = vpack.c.bf16 %v155_v32, %v155_v32  ;;  %v305_v36 = vpop.f32.mrb[3].mxu0 }
 0x128   :  { %311 = vmatmul.mubr.msk.bf16.vlgmr.msra.gmra.mrb[0].mxu1 %vm67_vm1, %v160_v35 }
 0x1fb   :  { %v221_v44 = vpop.f32.mrb[0].mxu1 }
 0x1fc   :  { %v222_v45 = vadd.f32 %v284_v42, %v221_v44  ;;  %v312_v46 = vpop.f32.mrb[1].mxu1 }
 0x1fd   :  { %v224_v47 = vpop.f32.mrb[2].mxu1 }
 0x1fe   :  { %v234_v48 = vrot.slane %v222_v45, %v233_v43  ;;  %v313_v50 = vpop.f32.mrb[3].mxu1 }
 0x200   :  { %v235_v51 = vcombine.high %v234_v48, %v234_v48  ;;  %v242_v52 = vrot.slane %v234_v48, %v233_v43 }
 0x202   :  { %v249_v53 = vrot.slane %v235_v51, %v233_v43  ;;  %v253_v54 = vrot.slane %v242_v52, %v252_v49 }
 0x204   :  { %v257_v55 = vrot.slane %v249_v53, %v252_v49  ;;  %260 = vst.msk [vmem:[#allocation8] sm:$0xff] %vm67_vm1, %v253_v54 }
 0x206   :  { %261 = vst.msk [vmem:[#allocation8 + $0x8] sm:$0xff] %vm67_vm1, %v257_v55 }
 0x207   :  { %406 = shalt.err (!%p403_p0)
}
 0x208   :  { %s407_s10 = scalar_lea.hbm %s545_s5, 256 }
 0x209   :  { %p408_p1 = scmp.ne.s32.totalorder %s545_s5, %s407_s10  ;;  %p411_p2 = scmp.lt.u32.totalorder %s407_s10, %s545_s5 }
 0x20b   :  { %p413_p3 = pnand %p411_p2, %p408_p1 }
 0x20d   :  { %416 = shalt.err (!%p413_p3)
}
 0x20e   :  { %s432_s15 = smov 128   ;;  %s433_s16 = smov 8  }
 0x20f   :  { %273 = dma.vmem_to_hbm [thread:$0]  %s268_s7, 256, %s545_s5, [#allocation4], %s432_s15, %s432_s15, %s433_s16  }
 0x210   :  { %421 = dma.done.wait [#allocation4], 256  }
 0x211   :  { %422 = vsyncadd [#allocation4], 4294967040 }
 0x212   :  { %277 = vsyncpa [#allocation3], 1 }
 0x213   :  { %278 = vsyncpa [#allocation6], 1 }
 0x214   :  { %279 = vsyncpa [#allocation4], 1 }

// kernel: tpu_custom_call.1
= control target key start
LH: loop header
LB: loop body
LE: loop exit
PB: predicated region body
PF: predicated region fallthrough
CT: control target
= control target key end

     0   :  { %10 = vsyncpa [#allocation3], 0  ;;  %s540_s0 = inlined_call_operand.hbm [shape: bf16[2,8,32], index: 0, kind: input, shape index: {}]   ;;  %s541_s1 = inlined_call_operand.hbm [shape: bf16[32,32], index: 1, kind: input, shape index: {}]   ;;  %s542_s2 = inlined_call_operand.vmem [shape: f32[1,32], index: 2, kind: input, shape index: {}]   ;;  %s543_s3 = inlined_call_operand.hbm [shape: bf16[32,32], index: 3, kind: input, shape index: {}]   ;;  %s544_s4 = inlined_call_operand.vmem [shape: f32[1,32], index: 4, kind: input, shape index: {}]   ;;  %s545_s5 = inlined_call_operand.hbm [shape: f32[2,8,32], index: 5, kind: output, shape index: {}]  }
   0x1   :  { %11 = vsyncpa [#allocation6], 0 }
   0x2   :  { %12 = vsyncpa [#allocation4], 0  ;;  %s423_s18 = smov [#allocation5]   ;;  %s424_s20 = smov [#allocation2]  }
   0x3   :  { %s30_s19 = sshll.u32 %s423_s18, 4  ;;  %s18_s21 = sshll.u32 %s424_s20, 4  ;;  %s31_s19 = int_to_ptr.vmem [resolvable:$true] %s30_s19  ;;  %s464_s21 = int_to_ptr.vmem [resolvable:$true] %s18_s21 }
   0x4   :  { %s329_s24 = scalar_lea.hbm %s541_s1, 256 }
   0x5   :  { %p330_p0 = scmp.ne.s32.totalorder %s541_s1, %s329_s24  ;;  %p333_p1 = scmp.lt.u32.totalorder %s329_s24, %s541_s1 }
   0x7   :  { %p335_p2 = pnand %p333_p1, %p330_p0 }
   0x9   :  { %338 = shalt.err (!%p335_p2)
}
   0xa   :  { %s339_s29 = scalar_lea.vmem %s31_s19, 256  ;;  %p344_p4 = scmp.lt.s32.totalorder %s31_s19, %s31_s19 }
   0xb   :  { %p340_p3 = scmp.ne.s32.totalorder %s31_s19, %s339_s29  ;;  %p345_p5 = scmp.lt.s32.totalorder %s339_s29, %s339_s29 }
   0xd   :  { %p346_p6 = por %p345_p5, %p344_p4 }
   0xf   :  { %p347_p7 = pnand %p346_p6, %p340_p3 }
  0x11   :  { %350 = shalt.err (!%p347_p7)
}
  0x12   :  { %s425_s30 = smov 64   ;;  %s426_s6 = smov 4  }
  0x13   :  { %36 = dma.hbm_to_vmem [thread:$0]  %s541_s1, 256, %s31_s19, [#allocation6], %s425_s30, %s425_s30, %s426_s6  }
  0x14   :  { %s351_s11 = scalar_lea.hbm %s540_s0, 128 }
  0x15   :  { %p352_p8 = scmp.ne.s32.totalorder %s540_s0, %s351_s11  ;;  %p355_p9 = scmp.lt.u32.totalorder %s351_s11, %s540_s0 }
  0x17   :  { %p357_p10 = pnand %p355_p9, %p352_p8 }
  0x19   :  { %360 = shalt.err (!%p357_p10)
}
  0x1a   :  { %s361_s16 = scalar_lea.vmem %s464_s21, 128  ;;  %p366_p12 = scmp.lt.s32.totalorder %s464_s21, %s464_s21 }
  0x1b   :  { %p362_p11 = scmp.ne.s32.totalorder %s464_s21, %s361_s16  ;;  %p367_p13 = scmp.lt.s32.totalorder %s361_s16, %s361_s16 }
  0x1d   :  { %p368_p0 = por %p367_p13, %p366_p12 }
  0x1f   :  { %p369_p1 = pnand %p368_p0, %p362_p11 }
  0x21   :  { %372 = shalt.err (!%p369_p1)
}
  0x22   :  { %24 = dma.hbm_to_vmem [thread:$0]  %s540_s0, 128, %s464_s21, [#allocation3], %s425_s30, %s425_s30, %s426_s6  }
  0x23   :  { %s427_s18 = smov [#allocation7]   ;;  %s373_s23 = scalar_lea.hbm %s543_s3, 256 }
  0x24   :  { %s44_s19 = sshll.u32 %s427_s18, 4  ;;  %p374_p2 = scmp.ne.s32.totalorder %s543_s3, %s373_s23  ;;  %s45_s19 = int_to_ptr.vmem [resolvable:$true] %s44_s19 }
  0x25   :  { %p377_p3 = scmp.lt.u32.totalorder %s373_s23, %s543_s3 }
  0x27   :  { %p379_p4 = pnand %p377_p3, %p374_p2 }
  0x29   :  { %382 = shalt.err (!%p379_p4)
}
  0x2a   :  { %s383_s28 = scalar_lea.vmem %s45_s19, 256  ;;  %p388_p6 = scmp.lt.s32.totalorder %s45_s19, %s45_s19 }
  0x2b   :  { %p384_p5 = scmp.ne.s32.totalorder %s45_s19, %s383_s28  ;;  %p389_p7 = scmp.lt.s32.totalorder %s383_s28, %s383_s28 }
  0x2d   :  { %p390_p8 = por %p389_p7, %p388_p6 }
  0x2f   :  { %p391_p9 = pnand %p390_p8, %p384_p5 }
  0x31   :  { %394 = shalt.err (!%p391_p9)
}
  0x32   :  { %50 = dma.hbm_to_vmem [thread:$0]  %s543_s3, 256, %s45_s19, [#allocation6], %s425_s30, %s425_s30, %s426_s6  }
  0x33   :  { %417 = dma.done.wait [#allocation3], 128  }
  0x34   :  { %418 = vsyncadd [#allocation3], 4294967168 }
  0x35   :  { %419 = dma.done.wait [#allocation6], 512  }
  0x36   :  { %420 = vsyncadd [#allocation6], 4294966784  ;;  %v428_v0 = vmov 0.0   ;;  %vm429_vm0 = vmmov 0   ;;  %v325_v1 = vld [vmem:[#allocation5] sm:$0xff]   ;;  %v326_v2 = vld [vmem:[#allocation5 + $0x8] sm:$0xff]   ;;  %v231_v39 = vlaneseq }
  0x37   :  { %298 = vmatprep.subr.bf16.mxu0 %v428_v0  ;;  %302 = vmatprep.mubr.msk.bf16.mxu0 %vm429_vm0, %v428_v0  ;;  %v289_v3 = vld [vmem:[#allocation2] sm:$0xff]   ;;  %vm67_vm1 = vcmask 261120   ;;  %v327_v6 = vld [vmem:[#allocation7] sm:$0xff]   ;;  %vm102_vm2 = vcmask 1041409   ;;  %v430_v37 = vmov 1966171168  }
  0x38   :  { %306 = vmatprep.subr.bf16.mxu1 %v428_v0  ;;  %310 = vmatprep.mubr.msk.bf16.mxu1 %vm429_vm0, %v428_v0  ;;  %v290_v4 = vunpack.c.l.bf16 %v289_v3  ;;  %v291_v5 = vunpack.c.h.bf16 %v289_v3  ;;  %v328_v29 = vld [vmem:[#allocation7 + $0x8] sm:$0xff]   ;;  %v229_v38 = vunpack.c.l.s4 %v430_v37  ;;  %v232_v41 = vshrl.u32 %v231_v39, 7 }
  0x39   :  { %299 = vmatpush3.bf16.msra.mxu0 %v325_v1  ;;  %307 = vmatpush3.bf16.msra.mxu1 %v327_v6  ;;  %v280_v30 = vld [vmem:[%s542_s2] ss:$0 sm:$0xff]  ;;  %s431_s2 = smov [#allocation8]  }
  0x3a   :  { %300 = vmatprep.subr.bf16.mxu0 %v428_v0  ;;  %v68_v7 = vsel %vm67_vm1, %v290_v4, 0.0  ;;  %v75_v8 = vsel %vm67_vm1, %v291_v5, 0.0  ;;  %308 = vmatprep.subr.bf16.mxu1 %v428_v0  ;;  %v230_v40 = vunpack.c.0.s8 %v229_v38  ;;  %v284_v42 = vld [vmem:[%s544_s4] ss:$0 sm:$0xff]  ;;  %v252_v49 = vsub.s32 0, %v232_v41  ;;  %s267_s7 = sshll.u32 %s431_s2, 4  ;;  %s268_s7 = int_to_ptr.vmem [resolvable:$true] %s267_s7 }
  0x3b   :  { %v69_v9 = vrot.slane %v68_v7, 4  ;;  %v76_v10 = vrot.slane %v75_v8, 4  ;;  %s395_s4 = scalar_lea.vmem %s268_s7, 256  ;;  %p400_p11 = scmp.lt.s32.totalorder %s268_s7, %s268_s7 }
  0x3c   :  { %v233_v43 = vsub.s32 %v230_v40, %v232_v41  ;;  %p396_p10 = scmp.ne.s32.totalorder %s268_s7, %s395_s4  ;;  %p401_p12 = scmp.lt.s32.totalorder %s395_s4, %s395_s4 }
  0x3d   :  { %301 = vmatpush3.bf16.msra.mxu0 %v326_v2  ;;  %v70_v11 = vadd.f32 %v69_v9, %v68_v7  ;;  %v77_v12 = vadd.f32 %v76_v10, %v75_v8  ;;  %309 = vmatpush3.bf16.msra.mxu1 %v328_v29 }
  0x3e   :  { %p402_p13 = por %p401_p12, %p400_p11 }
  0x3f   :  { %v71_v13 = vrot.slane %v70_v11, 2  ;;  %v78_v14 = vrot.slane %v77_v12, 2 }
  0x40   :  { %p403_p0 = pnand %p402_p13, %p396_p10 }
  0x41   :  { %v72_v15 = vadd.f32 %v71_v13, %v70_v11  ;;  %v79_v16 = vadd.f32 %v78_v14, %v77_v12 }
  0x43   :  { %v73_v17 = vrot.slane %v72_v15, 1  ;;  %v80_v18 = vrot.slane %v79_v16, 1 }
  0x45   :  { %v74_v19 = vadd.f32 %v73_v17, %v72_v15  ;;  %v81_v20 = vadd.f32 %v80_v18, %v79_v16 }
  0x47   :  { %v83_v21 = vmul.f32 0.125, %v74_v19  ;;  %v84_v22 = vmul.f32 0.125, %v81_v20 }
  0x49   :  { %v85_v23 = vpack.c.bf16 %v83_v21, %v83_v21  ;;  %v86_v24 = vpack.c.bf16 %v84_v22, %v84_v22 }
  0x4b   :  { %v100_v25 = vunpack.c.l.b16 %v85_v23  ;;  %v101_v26 = vunpack.c.l.b16 %v86_v24 }
  0x4d   :  { %v103_v27 = vsel %vm102_vm2, %v101_v26, %v100_v25 }
  0x4e   :  { %v104_v28 = vpack.c.b16 %v103_v27, %v103_v27 }
  0x50   :  { %303 = vmatmul.mubr.msk.bf16.vlgmr.msra.gmra.mrb[0].mxu0 %vm67_vm1, %v104_v28 }
 0x123   :  { %v154_v31 = vpop.f32.mrb[0].mxu0 }
 0x124   :  { %v155_v32 = vadd.f32 %v280_v30, %v154_v31  ;;  %v304_v33 = vpop.f32.mrb[1].mxu0 }
 0x125   :  { %v157_v34 = vpop.f32.mrb[2].mxu0 }
 0x126   :  { %v160_v35 = vpack.c.bf16 %v155_v32, %v155_v32  ;;  %v305_v36 = vpop.f32.mrb[3].mxu0 }
 0x128   :  { %311 = vmatmul.mubr.msk.bf16.vlgmr.msra.gmra.mrb[0].mxu1 %vm67_vm1, %v160_v35 }
 0x1fb   :  { %v221_v44 = vpop.f32.mrb[0].mxu1 }
 0x1fc   :  { %v222_v45 = vadd.f32 %v284_v42, %v221_v44  ;;  %v312_v46 = vpop.f32.mrb[1].mxu1 }
 0x1fd   :  { %v224_v47 = vpop.f32.mrb[2].mxu1 }
 0x1fe   :  { %v234_v48 = vrot.slane %v222_v45, %v233_v43  ;;  %v313_v50 = vpop.f32.mrb[3].mxu1 }
 0x200   :  { %v235_v51 = vcombine.high %v234_v48, %v234_v48  ;;  %v242_v52 = vrot.slane %v234_v48, %v233_v43 }
 0x202   :  { %v249_v53 = vrot.slane %v235_v51, %v233_v43  ;;  %v253_v54 = vrot.slane %v242_v52, %v252_v49 }
 0x204   :  { %v257_v55 = vrot.slane %v249_v53, %v252_v49  ;;  %260 = vst.msk [vmem:[#allocation8] sm:$0xff] %vm67_vm1, %v253_v54 }
 0x206   :  { %261 = vst.msk [vmem:[#allocation8 + $0x8] sm:$0xff] %vm67_vm1, %v257_v55 }
 0x207   :  { %406 = shalt.err (!%p403_p0)
}
 0x208   :  { %s407_s10 = scalar_lea.hbm %s545_s5, 256 }
 0x209   :  { %p408_p1 = scmp.ne.s32.totalorder %s545_s5, %s407_s10  ;;  %p411_p2 = scmp.lt.u32.totalorder %s407_s10, %s545_s5 }
 0x20b   :  { %p413_p3 = pnand %p411_p2, %p408_p1 }
 0x20d   :  { %416 = shalt.err (!%p413_p3)
}
 0x20e   :  { %s432_s15 = smov 128   ;;  %s433_s16 = smov 8  }
 0x20f   :  { %273 = dma.vmem_to_hbm [thread:$0]  %s268_s7, 256, %s545_s5, [#allocation4], %s432_s15, %s432_s15, %s433_s16  }
 0x210   :  { %421 = dma.done.wait [#allocation4], 256  }
 0x211   :  { %422 = vsyncadd [#allocation4], 4294967040 }
 0x212   :  { %277 = vsyncpa [#allocation3], 1 }
 0x213   :  { %278 = vsyncpa [#allocation6], 1 }
 0x214   :  { %279 = vsyncpa [#allocation4], 1 }

</bundles_post_ra>
